<compile_context>
chip_gen: v5e
topology: v5e:2x2
jax: 0.10.0
libtpu: 0.0.40
codegen_flags: <defaults>
</compile_context>

<pallas_src>
import functools

import jax
import jax.numpy as jnp
from jax import lax
from jax.experimental import pallas as pl
from jax.experimental.pallas import tpu as pltpu


# ---------------------------------------------------------------------------
# Pallas kernels
# ---------------------------------------------------------------------------
def gemm_bn_act_kernel(x_ref, w_ref, shift_ref, o_ref, *, relu):
    """(TM, K) @ (K, C)  + per-channel shift  (+ ReLU).  BN scale pre-folded into w."""
    acc = jnp.dot(x_ref[...], w_ref[...], preferred_element_type=jnp.float32)
    y = acc + shift_ref[...]
    if relu:
        y = jnp.maximum(y, 0.0)
    o_ref[...] = y


def tail_proj_kernel(m_ref, w3_ref, shift3_ref, r_ref, ws_ref, shifts_ref, o_ref):
    """Fused conv3+BN3 + projection-shortcut(conv+BN) + residual add + ReLU."""
    y = jnp.dot(m_ref[...], w3_ref[...], preferred_element_type=jnp.float32) + shift3_ref[...]
    s = jnp.dot(r_ref[...], ws_ref[...], preferred_element_type=jnp.float32) + shifts_ref[...]
    o_ref[...] = jnp.maximum(y + s, 0.0)


def tail_id_kernel(m_ref, w3_ref, shift3_ref, r_ref, o_ref):
    """Fused conv3+BN3 + identity residual add + ReLU."""
    y = jnp.dot(m_ref[...], w3_ref[...], preferred_element_type=jnp.float32) + shift3_ref[...]
    o_ref[...] = jnp.maximum(y + r_ref[...], 0.0)


# ---------------------------------------------------------------------------
# Host-side helpers
# ---------------------------------------------------------------------------
def _round_up(x, m):
    return (x + m - 1) // m * m


def _pick_tile(m, preferred):
    # Row tile: multiple of 8, no larger than the (padded) problem.
    return min(preferred, _round_up(m, 8))


def _pad_rows(a, rows):
    pad = rows - a.shape[0]
    if pad == 0:
        return a
    return jnp.pad(a, ((0, pad), (0, 0)))


def _fold_bn(w2d, b, gamma, beta, mean, var, eps):
    """Fold conv bias + inference BatchNorm into (scaled weights, shift)."""
    s = gamma / jnp.sqrt(var + eps)                       # (C,)
    w_eff = w2d * s[None, :]                              # (K, C)
    shift = (b - mean) * s + beta                         # (C,)
    return w_eff, shift


def _gemm_bn_act(x2d, w2d, shift, *, relu, block_rows):
    """Tiled conv-as-GEMM + folded-BN + optional ReLU."""
    M, K = x2d.shape
    C = w2d.shape[1]
    tm = _pick_tile(M, block_rows)
    mp = _round_up(M, tm)
    xb = _pad_rows(x2d, mp).astype(jnp.bfloat16)
    out = pl.pallas_call(
        functools.partial(gemm_bn_act_kernel, relu=relu),
        out_shape=jax.ShapeDtypeStruct((mp, C), jnp.float32),
        grid=(mp // tm,),
        in_specs=[
            pl.BlockSpec((tm, K), lambda i: (i, 0)),
            pl.BlockSpec((K, C), lambda i: (0, 0)),       # weights resident
            pl.BlockSpec((1, C), lambda i: (0, 0)),       # shift resident
        ],
        out_specs=pl.BlockSpec((tm, C), lambda i: (i, 0)),
        compiler_params=pltpu.CompilerParams(dimension_semantics=("parallel",)),
    )(xb, w2d.astype(jnp.bfloat16), shift.reshape(1, C).astype(jnp.float32))
    return out[:M]


def _tail_proj(m2d, w3, shift3, r2d, ws, shifts, *, block_rows):
    M, Cmid = m2d.shape
    Cout = w3.shape[1]
    Cin = r2d.shape[1]
    tm = _pick_tile(M, block_rows)
    mp = _round_up(M, tm)
    mb = _pad_rows(m2d, mp).astype(jnp.bfloat16)
    rb = _pad_rows(r2d, mp).astype(jnp.bfloat16)
    out = pl.pallas_call(
        tail_proj_kernel,
        out_shape=jax.ShapeDtypeStruct((mp, Cout), jnp.float32),
        grid=(mp // tm,),
        in_specs=[
            pl.BlockSpec((tm, Cmid), lambda i: (i, 0)),
            pl.BlockSpec((Cmid, Cout), lambda i: (0, 0)),
            pl.BlockSpec((1, Cout), lambda i: (0, 0)),
            pl.BlockSpec((tm, Cin), lambda i: (i, 0)),
            pl.BlockSpec((Cin, Cout), lambda i: (0, 0)),
            pl.BlockSpec((1, Cout), lambda i: (0, 0)),
        ],
        out_specs=pl.BlockSpec((tm, Cout), lambda i: (i, 0)),
        compiler_params=pltpu.CompilerParams(dimension_semantics=("parallel",)),
    )(mb, w3.astype(jnp.bfloat16), shift3.reshape(1, Cout).astype(jnp.float32),
      rb, ws.astype(jnp.bfloat16), shifts.reshape(1, Cout).astype(jnp.float32))
    return out[:M]


def _tail_id(m2d, w3, shift3, r2d, *, block_rows):
    M, Cmid = m2d.shape
    Cout = w3.shape[1]
    tm = _pick_tile(M, block_rows)
    mp = _round_up(M, tm)
    mb = _pad_rows(m2d, mp).astype(jnp.bfloat16)
    rb = _pad_rows(r2d, mp).astype(jnp.float32)           # residual added in f32
    out = pl.pallas_call(
        tail_id_kernel,
        out_shape=jax.ShapeDtypeStruct((mp, Cout), jnp.float32),
        grid=(mp // tm,),
        in_specs=[
            pl.BlockSpec((tm, Cmid), lambda i: (i, 0)),
            pl.BlockSpec((Cmid, Cout), lambda i: (0, 0)),
            pl.BlockSpec((1, Cout), lambda i: (0, 0)),
            pl.BlockSpec((tm, Cout), lambda i: (i, 0)),
        ],
        out_specs=pl.BlockSpec((tm, Cout), lambda i: (i, 0)),
        compiler_params=pltpu.CompilerParams(dimension_semantics=("parallel",)),
    )(mb, w3.astype(jnp.bfloat16), shift3.reshape(1, Cout).astype(jnp.float32), rb)
    return out[:M]


# ---------------------------------------------------------------------------
# BottleNeck forward (host wrapper around the Pallas kernels)
# ---------------------------------------------------------------------------
def bottleneck_forward(x, params, *, size_matching, eps=1e-5, block_rows=512):
    """x: (N, Cin, H, W) float32 NCHW -> (N, Cout, Ho, Wo) float32 NCHW."""
    N, Cin, H, W = x.shape
    Cmid = params["w1"].shape[0]
    Cout = params["w3"].shape[0]
    stride = 2 if size_matching else 1
    need_channel_matching = "ws" in params

    x_nhwc = jnp.transpose(x, (0, 2, 3, 1))               # (N, H, W, Cin)
    M = N * H * W
    x2d = x_nhwc.reshape(M, Cin)

    # ---- conv1: 1x1 in->mid, BN, ReLU ----
    w1_2d = params["w1"].reshape(Cmid, Cin).T             # (Cin, Cmid)
    w1_eff, shift1 = _fold_bn(w1_2d, params["b1"], *params["bn1"], eps)
    a1 = _gemm_bn_act(x2d, w1_eff, shift1, relu=True, block_rows=block_rows)
    a1 = a1.reshape(N, H, W, Cmid)

    # ---- conv2: 3x3 mid->mid, stride s, pad 1, BN, ReLU (im2col GEMM) ----
    Ho = (H + 2 - 3) // stride + 1
    Wo = (W + 2 - 3) // stride + 1
    a1p = jnp.pad(a1, ((0, 0), (1, 1), (1, 1), (0, 0)))
    taps = []
    for ky in range(3):
        for kx in range(3):
            taps.append(a1p[:, ky:ky + stride * Ho:stride, kx:kx + stride * Wo:stride, :])
    patches = jnp.stack(taps, axis=3)                      # (N, Ho, Wo, 9, Cmid)
    M2 = N * Ho * Wo
    patches = patches.reshape(M2, 9 * Cmid)                # K ordered (ky, kx, cin)
    w2_2d = params["w2"].transpose(2, 3, 1, 0).reshape(9 * Cmid, Cmid)
    w2_eff, shift2 = _fold_bn(w2_2d, params["b2"], *params["bn2"], eps)
    a2 = _gemm_bn_act(patches, w2_eff, shift2, relu=True, block_rows=block_rows)  # (M2, Cmid)

    # ---- conv3 + BN3 + shortcut + residual add + final ReLU (fused kernel) ----
    w3_2d = params["w3"].reshape(Cout, Cmid).T             # (Cmid, Cout)
    w3_eff, shift3 = _fold_bn(w3_2d, params["b3"], *params["bn3"], eps)

    if need_channel_matching:
        xs = x_nhwc[:, ::stride, ::stride, :].reshape(M2, Cin)   # strided 1x1 input
        ws_2d = params["ws"].reshape(Cout, Cin).T
        ws_eff, shifts = _fold_bn(ws_2d, params["bs"], *params["bns"], eps)
        out2d = _tail_proj(a2, w3_eff, shift3, xs, ws_eff, shifts, block_rows=block_rows)
    else:
        # Identity residual (requires Cin == Cout and stride == 1, as in the module)
        out2d = _tail_id(a2, w3_eff, shift3, x2d, block_rows=block_rows)

    return out2d.reshape(N, Ho, Wo, Cout).transpose(0, 3, 1, 2)


# ---------------------------------------------------------------------------
# Pure-JAX (f32) reference for correctness check
# ---------------------------------------------------------------------------
def _conv_bn_ref(x, w, b, gamma, beta, mean, var, stride, padding, eps):
    y = lax.conv_general_dilated(
        x, w, window_strides=(stride, stride),
        padding=[(padding, padding), (padding, padding)],
        dimension_numbers=("NCHW", "OIHW", "NCHW"))
    y = y + b[None, :, None, None]
    s = gamma / jnp.sqrt(var + eps)
    return (y - mean[None, :, None, None]) * s[None, :, None, None] + beta[None, :, None, None]


def reference_forward(x, params, *, size_matching, eps=1e-5):
    stride = 2 if size_matching else 1
    h = jnp.maximum(_conv_bn_ref(x, params["w1"], params["b1"], *params["bn1"], 1, 0, eps), 0.0)
    h = jnp.maximum(_conv_bn_ref(h, params["w2"], params["b2"], *params["bn2"], stride, 1, eps), 0.0)
    h = _conv_bn_ref(h, params["w3"], params["b3"], *params["bn3"], 1, 0, eps)
    if "ws" in params:
        r = _conv_bn_ref(x, params["ws"], params["bs"], *params["bns"], stride, 0, eps)
    else:
        r = x
    return jnp.maximum(h + r, 0.0)


# ---------------------------------------------------------------------------
# Deterministic parameter construction
# ---------------------------------------------------------------------------
def make_params(key, cin, cout):
    cmid = cout // 4
    ks = jax.random.split(key, 12)

    def bn(k, c):
        k1, k2, k3, k4 = jax.random.split(k, 4)
        gamma = 1.0 + 0.1 * jax.random.normal(k1, (c,), jnp.float32)
        beta = 0.1 * jax.random.normal(k2, (c,), jnp.float32)
        mean = 0.05 * jax.random.normal(k3, (c,), jnp.float32)
        var = 1.0 + 0.1 * jax.nn.softplus(jax.random.normal(k4, (c,), jnp.float32))
        return gamma, beta, mean, var

    p = {
        "w1": 0.1 * jax.random.normal(ks[0], (cmid, cin, 1, 1), jnp.float32),
        "b1": 0.1 * jax.random.normal(ks[1], (cmid,), jnp.float32),
        "bn1": bn(ks[2], cmid),
        "w2": 0.05 * jax.random.normal(ks[3], (cmid, cmid, 3, 3), jnp.float32),
        "b2": 0.1 * jax.random.normal(ks[4], (cmid,), jnp.float32),
        "bn2": bn(ks[5], cmid),
        "w3": 0.1 * jax.random.normal(ks[6], (cout, cmid, 1, 1), jnp.float32),
        "b3": 0.1 * jax.random.normal(ks[7], (cout,), jnp.float32),
        "bn3": bn(ks[8], cout),
    }
    if cin != cout:
        p["ws"] = 0.1 * jax.random.normal(ks[9], (cout, cin, 1, 1), jnp.float32)
        p["bs"] = 0.1 * jax.random.normal(ks[10], (cout,), jnp.float32)
        p["bns"] = bn(ks[11], cout)
    return p


if __name__ == "__main__":
    key = jax.random.PRNGKey(0)
    k_x, k_p1, k_p2 = jax.random.split(key, 3)

    N, Cin, H, W = 2, 32, 16, 16
    Cout = 64
    x = jax.random.normal(k_x, (N, Cin, H, W), dtype=jnp.float32)

    # Config A: projection shortcut (in != out) with spatial downsampling (stride 2).
    params_a = make_params(k_p1, Cin, Cout)
    out_a = jax.block_until_ready(
        bottleneck_forward(x, params_a, size_matching=True, block_rows=256))
    ref_a = reference_forward(x, params_a, size_matching=True)
    assert out_a.shape == (N, Cout, H // 2, W // 2), out_a.shape
    assert jnp.allclose(out_a, ref_a, atol=5e-2, rtol=5e-2), \
        float(jnp.max(jnp.abs(out_a - ref_a)))

    # Config B: identity shortcut (in == out, stride 1).
    params_b = make_params(k_p2, Cin, Cin)
    out_b = jax.block_until_ready(
        bottleneck_forward(x, params_b, size_matching=False, block_rows=256))
    ref_b = reference_forward(x, params_b, size_matching=False)
    assert out_b.shape == (N, Cin, H, W), out_b.shape
    assert jnp.allclose(out_b, ref_b, atol=5e-2, rtol=5e-2), \
        float(jnp.max(jnp.abs(out_b - ref_b)))

    print("KERNEL_OK")
</pallas_src>

<mosaic_0001>
module attributes {stable_mosaic.version = 11 : i64} {
  func.func @gemm_bn_act_kernel(%arg0: i32, %arg1: memref<256x32xbf16, #tpu.memory_space<vmem>>, %arg2: memref<32x16xbf16, #tpu.memory_space<vmem>>, %arg3: memref<1x16xf32, #tpu.memory_space<vmem>>, %arg4: memref<256x16xf32, #tpu.memory_space<vmem>>) attributes {dimension_semantics = [#tpu.dimension_semantics<parallel>], iteration_bounds = array<i64: 2>, scalar_prefetch = 0 : i64, scratch_operands = 0 : i64, tpu.core_type = #tpu.core_type<tc>, window_params = [{transform_indices = @transform_0, window_bounds = array<i64: 256, 32>}, {pipeline_mode = #tpu.pipeline_mode<synchronous>, transform_indices = @transform_1, window_bounds = array<i64: 32, 16>}, {pipeline_mode = #tpu.pipeline_mode<synchronous>, transform_indices = @transform_2, window_bounds = array<i64: 1, 16>}, {transform_indices = @transform_3, window_bounds = array<i64: 256, 16>}]} {
    %c0 = arith.constant 0 : index
    %c0_0 = arith.constant 0 : index
    %0 = vector.load %arg1[%c0, %c0_0] : memref<256x32xbf16, #tpu.memory_space<vmem>>, vector<256x32xbf16>
    %c0_1 = arith.constant 0 : index
    %c0_2 = arith.constant 0 : index
    %1 = vector.load %arg2[%c0_1, %c0_2] : memref<32x16xbf16, #tpu.memory_space<vmem>>, vector<32x16xbf16>
    %cst = arith.constant dense<0.000000e+00> : vector<256x16xf32>
    %2 = tpu.matmul %0, %1, %cst {dimension_numbers = #tpu.dot_dimension_numbers<[1], [0], [0], [1], [0, 0, 1, 1], [], []>} : vector<256x32xbf16>, vector<32x16xbf16>, vector<256x16xf32> -> vector<256x16xf32>
    %c0_3 = arith.constant 0 : index
    %c0_4 = arith.constant 0 : index
    %3 = vector.load %arg3[%c0_3, %c0_4] : memref<1x16xf32, #tpu.memory_space<vmem>>, vector<1x16xf32>
    %4 = vector.broadcast %3 : vector<1x16xf32> to vector<256x16xf32>
    %5 = arith.addf %2, %4 : vector<256x16xf32>
    %cst_5 = arith.constant 0.000000e+00 : f32
    %6 = vector.broadcast %cst_5 : f32 to vector<256x16xf32>
    %7 = arith.maximumf %5, %6 : vector<256x16xf32>
    %c0_6 = arith.constant 0 : index
    %c0_7 = arith.constant 0 : index
    %8 = vector.load %arg4[%c0_6, %c0_7] : memref<256x16xf32, #tpu.memory_space<vmem>>, vector<256x16xf32>
    tpu.vector_store %arg4[%c0_6, %c0_7], %7 {strides = array<i32>} : memref<256x16xf32, #tpu.memory_space<vmem>>, vector<256x16xf32>,
    return
  }
  func.func @transform_0(%arg0: i32) -> (i32, i32) {
    %c0_i32 = arith.constant 0 : i32
    %c0_i32_0 = arith.constant 0 : i32
    return %arg0, %c0_i32 : i32, i32
  }
  func.func @transform_1(%arg0: i32) -> (i32, i32) {
    %c0_i32 = arith.constant 0 : i32
    %c0_i32_0 = arith.constant 0 : i32
    %c0_i32_1 = arith.constant 0 : i32
    return %c0_i32, %c0_i32_0 : i32, i32
  }
  func.func @transform_2(%arg0: i32) -> (i32, i32) {
    %c0_i32 = arith.constant 0 : i32
    %c0_i32_0 = arith.constant 0 : i32
    %c0_i32_1 = arith.constant 0 : i32
    return %c0_i32, %c0_i32_0 : i32, i32
  }
  func.func @transform_3(%arg0: i32) -> (i32, i32) {
    %c0_i32 = arith.constant 0 : i32
    %c0_i32_0 = arith.constant 0 : i32
    return %arg0, %c0_i32 : i32, i32
  }
}

</mosaic_0001>

<bundles_post_ra>
// kernel: tpu_custom_call.1
= control target key start
LH: loop header
LB: loop body
LE: loop exit
PB: predicated region body
PF: predicated region fallthrough
CT: control target
= control target key end

     0   :  { %s726_s12 = smov 0   ;;  %s890_s0 = inlined_call_operand.vmem [shape: bf16[512,32], index: 0, kind: input, shape index: {}]   ;;  %s891_s1 = inlined_call_operand.vmem [shape: bf16[32,16], index: 1, kind: input, shape index: {}]   ;;  %s892_s2 = inlined_call_operand.vmem [shape: f32[1,16], index: 2, kind: input, shape index: {}]   ;;  %s893_s3 = inlined_call_operand.vmem [shape: f32[512,16], index: 3, kind: output, shape index: {}]  }
   0x1 LB: > { %s566_s13 = sadd.s32 4294967295, %s704_s12   ;;  %p570_p0 = scmp.ge.s32.totalorder %s704_s12, 1  ;;  %s704_s12 = sphi %s726_s12, %s13_s12  }
   0x2   : > { %p138_p1 = scmp.lt.s32.totalorder %s704_s12, 3 }
   0x4   : > { %p139_p2 = pnand %p570_p0, %p138_p1 }
   0x5   : > { %s571_s16 = sshll.u32 (!%p139_p2), %s566_s13, 5 }
   0x6   : > { %142 = sbr.rel (%p139_p2) target bundleno = 214 (0xd6), region = 32  ;;  %p163_p3 = scmp.lt.s32.totalorder (!%p139_p2), %s571_s16, 63 }
   0xb   : > { %v682_v0 = vld [vmem:[%s891_s1 + $0x8] sm:$0xff]  ;;  %v681_v1 = vld [vmem:[%s891_s1] sm:$0xff]  ;;  %s895_s16 = smov (!%p163_p3, %s571_s16), 63  ;;  %vm307_vm0 = vcmask 261120   ;;  %vm477_vm1 = vcmask 130048  }
   0xc   : > { %362 = vmatpush.bf16.msra.mxu0 %v682_v0  ;;  %683 = vmatpush.bf16.msra.mxu1 %v682_v0  ;;  %s572_s19 = sshll.u32 %s895_s16, 2  ;;  %v783_v18 = vld [vmem:[%s892_s2] ss:$0 sm:$0xff]  ;;  %s574_s25 = sshll.u32 %s895_s16, 3 }
   0xd   : > { %684 = vmatpush.bf16.msra.mxu2 %v682_v0  ;;  %685 = vmatpush.bf16.msra.mxu3 %v682_v0  ;;  %s746_s22 = scalar_lea.vmem %s890_s0, %s572_s19  ;;  %s791_s28 = scalar_lea.vmem %s893_s3, %s574_s25 }
   0xe   : > { %v665_v2 = vld [vmem:[%s746_s22] sm:$0xff]  ;;  %v666_v6 = vld [vmem:[%s746_s22 + $0x8] sm:$0xff]  ;;  %v667_v10 = vld [vmem:[%s746_s22 + $0x10] sm:$0xff] }
   0xf   : > { %v669_v3 = vld [vmem:[%s746_s22 + $0x20] sm:$0xff]  ;;  %v670_v7 = vld [vmem:[%s746_s22 + $0x28] sm:$0xff]  ;;  %v671_v11 = vld [vmem:[%s746_s22 + $0x30] sm:$0xff] }
  0x10   : > { %363 = vmatpush.bf16.msra.mxu0 %v681_v1  ;;  %686 = vmatpush.bf16.msra.mxu1 %v681_v1  ;;  %v673_v4 = vld [vmem:[%s746_s22 + $0x40] sm:$0xff]  ;;  %v674_v8 = vld [vmem:[%s746_s22 + $0x48] sm:$0xff]  ;;  %v675_v12 = vld [vmem:[%s746_s22 + $0x50] sm:$0xff] }
  0x11   : > { %687 = vmatpush.bf16.msra.mxu2 %v681_v1  ;;  %688 = vmatpush.bf16.msra.mxu3 %v681_v1  ;;  %v677_v5 = vld [vmem:[%s746_s22 + $0x60] sm:$0xff]  ;;  %v678_v9 = vld [vmem:[%s746_s22 + $0x68] sm:$0xff]  ;;  %v679_v13 = vld [vmem:[%s746_s22 + $0x70] sm:$0xff] }
  0x12   : > { %v668_v14 = vld [vmem:[%s746_s22 + $0x18] sm:$0xff] }
  0x13   : > { %647 = vmatmul.msk.bf16.vlgmr.msra.gmra.mxu0 %vm307_vm0, %v665_v2  ;;  %651 = vmatmul.msk.bf16.vlgmr.msra.gmra.mxu1 %vm307_vm0, %v669_v3  ;;  %v672_v15 = vld [vmem:[%s746_s22 + $0x38] sm:$0xff] }
  0x14   : > { %655 = vmatmul.msk.bf16.vlgmr.msra.gmra.mxu2 %vm307_vm0, %v673_v4  ;;  %659 = vmatmul.msk.bf16.vlgmr.msra.gmra.mxu3 %vm307_vm0, %v677_v5  ;;  %v676_v16 = vld [vmem:[%s746_s22 + $0x58] sm:$0xff] }
  0x15   : > { %v680_v17 = vld [vmem:[%s746_s22 + $0x78] sm:$0xff] }
  0x23   : > { %648 = vmatmul.msk.bf16.gmra.mxu0 %vm307_vm0, %v666_v6  ;;  %652 = vmatmul.msk.bf16.gmra.mxu1 %vm307_vm0, %v670_v7 }
  0x24   : > { %656 = vmatmul.msk.bf16.gmra.mxu2 %vm307_vm0, %v674_v8  ;;  %660 = vmatmul.msk.bf16.gmra.mxu3 %vm307_vm0, %v678_v9 }
  0x33   : > { %649 = vmatmul.msk.bf16.gmra.mxu0 %vm307_vm0, %v667_v10  ;;  %653 = vmatmul.msk.bf16.gmra.mxu1 %vm307_vm0, %v671_v11 }
  0x34   : > { %657 = vmatmul.msk.bf16.gmra.mxu2 %vm307_vm0, %v675_v12  ;;  %661 = vmatmul.msk.bf16.gmra.mxu3 %vm307_vm0, %v679_v13 }
  0x43   : > { %650 = vmatmul.msk.bf16.gmra.mxu0 %vm307_vm0, %v668_v14  ;;  %654 = vmatmul.msk.bf16.gmra.mxu1 %vm307_vm0, %v672_v15 }
  0x44   : > { %658 = vmatmul.msk.bf16.gmra.mxu2 %vm307_vm0, %v676_v16  ;;  %662 = vmatmul.msk.bf16.gmra.mxu3 %vm307_vm0, %v680_v17 }
  0x90   : > { %v365_v19 = vpop.f32.mrf.mxu0  ;;  %v385_v20 = vpop.f32.mrf.mxu1 }
  0x91   : > { %v366_v21 = vadd.f32 %v783_v18, %v365_v19  ;;  %v386_v22 = vadd.f32 %v783_v18, %v385_v20 }
  0x93   : > { %v445_v23 = vmax.f32 %v366_v21, 0.0  ;;  %v453_v24 = vmax.f32 %v386_v22, 0.0 }
  0x95   : > { %478 = vst.msk [vmem:[%s791_s28] sm:$0xff] %vm477_vm1, %v445_v23 }
  0x96   : > { %486 = vst.msk [vmem:[%s791_s28 + $0x40] sm:$0xff] %vm477_vm1, %v453_v24 }
  0x97   : > { %v405_v25 = vpop.f32.mrf.mxu2  ;;  %v425_v26 = vpop.f32.mrf.mxu3 }
  0x98   : > { %v406_v27 = vadd.f32 %v783_v18, %v405_v25  ;;  %v426_v28 = vadd.f32 %v783_v18, %v425_v26  ;;  %v367_v29 = vpop.f32.mrf.mxu0  ;;  %v387_v30 = vpop.f32.mrf.mxu1 }
  0x99   : > { %v368_v31 = vadd.f32 %v783_v18, %v367_v29  ;;  %v388_v32 = vadd.f32 %v783_v18, %v387_v30 }
  0x9a   : > { %v461_v33 = vmax.f32 %v406_v27, 0.0  ;;  %v469_v34 = vmax.f32 %v426_v28, 0.0 }
  0x9b   : > { %v446_v35 = vmax.f32 %v368_v31, 0.0  ;;  %v454_v36 = vmax.f32 %v388_v32, 0.0 }
  0x9c   : > { %494 = vst.msk [vmem:[%s791_s28 + $0x80] sm:$0xff] %vm477_vm1, %v461_v33 }
  0x9d   : > { %502 = vst.msk [vmem:[%s791_s28 + $0xc0] sm:$0xff] %vm477_vm1, %v469_v34 }
  0x9e   : > { %479 = vst.msk [vmem:[%s791_s28 + $0x8] sm:$0xff] %vm477_vm1, %v446_v35 }
  0x9f   : > { %487 = vst.msk [vmem:[%s791_s28 + $0x48] sm:$0xff] %vm477_vm1, %v454_v36  ;;  %v407_v37 = vpop.f32.mrf.mxu2  ;;  %v427_v38 = vpop.f32.mrf.mxu3 }
  0xa0   : > { %v408_v39 = vadd.f32 %v783_v18, %v407_v37  ;;  %v428_v40 = vadd.f32 %v783_v18, %v427_v38  ;;  %v370_v41 = vpop.f32.mrf.mxu0  ;;  %v390_v42 = vpop.f32.mrf.mxu1 }
  0xa1   : > { %v371_v43 = vadd.f32 %v783_v18, %v370_v41  ;;  %v391_v44 = vadd.f32 %v783_v18, %v390_v42 }
  0xa2   : > { %v462_v45 = vmax.f32 %v408_v39, 0.0  ;;  %v470_v46 = vmax.f32 %v428_v40, 0.0 }
  0xa3   : > { %v447_v47 = vmax.f32 %v371_v43, 0.0  ;;  %v455_v48 = vmax.f32 %v391_v44, 0.0 }
  0xa4   : > { %495 = vst.msk [vmem:[%s791_s28 + $0x88] sm:$0xff] %vm477_vm1, %v462_v45 }
  0xa5   : > { %503 = vst.msk [vmem:[%s791_s28 + $0xc8] sm:$0xff] %vm477_vm1, %v470_v46 }
  0xa6   : > { %480 = vst.msk [vmem:[%s791_s28 + $0x10] sm:$0xff] %vm477_vm1, %v447_v47 }
  0xa7   : > { %488 = vst.msk [vmem:[%s791_s28 + $0x50] sm:$0xff] %vm477_vm1, %v455_v48  ;;  %v410_v49 = vpop.f32.mrf.mxu2  ;;  %v430_v50 = vpop.f32.mrf.mxu3 }
  0xa8   : > { %v411_v51 = vadd.f32 %v783_v18, %v410_v49  ;;  %v431_v52 = vadd.f32 %v783_v18, %v430_v50  ;;  %v372_v53 = vpop.f32.mrf.mxu0  ;;  %v392_v54 = vpop.f32.mrf.mxu1 }
  0xa9   : > { %v373_v55 = vadd.f32 %v783_v18, %v372_v53  ;;  %v393_v56 = vadd.f32 %v783_v18, %v392_v54 }
  0xaa   : > { %v463_v57 = vmax.f32 %v411_v51, 0.0  ;;  %v471_v58 = vmax.f32 %v431_v52, 0.0 }
  0xab   : > { %v448_v59 = vmax.f32 %v373_v55, 0.0  ;;  %v456_v60 = vmax.f32 %v393_v56, 0.0 }
  0xac   : > { %496 = vst.msk [vmem:[%s791_s28 + $0x90] sm:$0xff] %vm477_vm1, %v463_v57 }
  0xad   : > { %504 = vst.msk [vmem:[%s791_s28 + $0xd0] sm:$0xff] %vm477_vm1, %v471_v58 }
  0xae   : > { %481 = vst.msk [vmem:[%s791_s28 + $0x18] sm:$0xff] %vm477_vm1, %v448_v59 }
  0xaf   : > { %489 = vst.msk [vmem:[%s791_s28 + $0x58] sm:$0xff] %vm477_vm1, %v456_v60  ;;  %v412_v61 = vpop.f32.mrf.mxu2  ;;  %v432_v62 = vpop.f32.mrf.mxu3 }
  0xb0   : > { %v413_v63 = vadd.f32 %v783_v18, %v412_v61  ;;  %v433_v0 = vadd.f32 %v783_v18, %v432_v62  ;;  %v375_v1 = vpop.f32.mrf.mxu0  ;;  %v395_v2 = vpop.f32.mrf.mxu1 }
  0xb1   : > { %v376_v3 = vadd.f32 %v783_v18, %v375_v1  ;;  %v396_v4 = vadd.f32 %v783_v18, %v395_v2 }
  0xb2   : > { %v464_v5 = vmax.f32 %v413_v63, 0.0  ;;  %v472_v6 = vmax.f32 %v433_v0, 0.0 }
  0xb3   : > { %v449_v7 = vmax.f32 %v376_v3, 0.0  ;;  %v457_v8 = vmax.f32 %v396_v4, 0.0 }
  0xb4   : > { %497 = vst.msk [vmem:[%s791_s28 + $0x98] sm:$0xff] %vm477_vm1, %v464_v5 }
  0xb5   : > { %505 = vst.msk [vmem:[%s791_s28 + $0xd8] sm:$0xff] %vm477_vm1, %v472_v6 }
  0xb6   : > { %482 = vst.msk [vmem:[%s791_s28 + $0x20] sm:$0xff] %vm477_vm1, %v449_v7 }
  0xb7   : > { %490 = vst.msk [vmem:[%s791_s28 + $0x60] sm:$0xff] %vm477_vm1, %v457_v8  ;;  %v415_v9 = vpop.f32.mrf.mxu2  ;;  %v435_v10 = vpop.f32.mrf.mxu3 }
  0xb8   : > { %v416_v11 = vadd.f32 %v783_v18, %v415_v9  ;;  %v436_v12 = vadd.f32 %v783_v18, %v435_v10  ;;  %v377_v13 = vpop.f32.mrf.mxu0  ;;  %v397_v14 = vpop.f32.mrf.mxu1 }
  0xb9   : > { %v378_v15 = vadd.f32 %v783_v18, %v377_v13  ;;  %v398_v16 = vadd.f32 %v783_v18, %v397_v14 }
  0xba   : > { %v465_v17 = vmax.f32 %v416_v11, 0.0  ;;  %v473_v19 = vmax.f32 %v436_v12, 0.0 }
  0xbb   : > { %v450_v20 = vmax.f32 %v378_v15, 0.0  ;;  %v458_v21 = vmax.f32 %v398_v16, 0.0 }
  0xbc   : > { %498 = vst.msk [vmem:[%s791_s28 + $0xa0] sm:$0xff] %vm477_vm1, %v465_v17 }
  0xbd   : > { %506 = vst.msk [vmem:[%s791_s28 + $0xe0] sm:$0xff] %vm477_vm1, %v473_v19 }
  0xbe   : > { %483 = vst.msk [vmem:[%s791_s28 + $0x28] sm:$0xff] %vm477_vm1, %v450_v20 }
  0xbf   : > { %491 = vst.msk [vmem:[%s791_s28 + $0x68] sm:$0xff] %vm477_vm1, %v458_v21  ;;  %v417_v22 = vpop.f32.mrf.mxu2  ;;  %v437_v23 = vpop.f32.mrf.mxu3 }
  0xc0   : > { %v418_v24 = vadd.f32 %v783_v18, %v417_v22  ;;  %v438_v25 = vadd.f32 %v783_v18, %v437_v23  ;;  %v380_v26 = vpop.f32.mrf.mxu0  ;;  %v400_v27 = vpop.f32.mrf.mxu1 }
  0xc1   : > { %v381_v28 = vadd.f32 %v783_v18, %v380_v26  ;;  %v401_v29 = vadd.f32 %v783_v18, %v400_v27 }
  0xc2   : > { %v466_v30 = vmax.f32 %v418_v24, 0.0  ;;  %v474_v31 = vmax.f32 %v438_v25, 0.0 }
  0xc3   : > { %v451_v32 = vmax.f32 %v381_v28, 0.0  ;;  %v459_v33 = vmax.f32 %v401_v29, 0.0 }
  0xc4   : > { %499 = vst.msk [vmem:[%s791_s28 + $0xa8] sm:$0xff] %vm477_vm1, %v466_v30 }
  0xc5   : > { %507 = vst.msk [vmem:[%s791_s28 + $0xe8] sm:$0xff] %vm477_vm1, %v474_v31 }
  0xc6   : > { %484 = vst.msk [vmem:[%s791_s28 + $0x30] sm:$0xff] %vm477_vm1, %v451_v32 }
  0xc7   : > { %492 = vst.msk [vmem:[%s791_s28 + $0x70] sm:$0xff] %vm477_vm1, %v459_v33  ;;  %v420_v34 = vpop.f32.mrf.mxu2  ;;  %v440_v35 = vpop.f32.mrf.mxu3 }
  0xc8   : > { %v421_v36 = vadd.f32 %v783_v18, %v420_v34  ;;  %v441_v37 = vadd.f32 %v783_v18, %v440_v35  ;;  %v382_v38 = vpop.f32.mrf.mxu0  ;;  %v402_v39 = vpop.f32.mrf.mxu1 }
  0xc9   : > { %v383_v40 = vadd.f32 %v783_v18, %v382_v38  ;;  %v403_v41 = vadd.f32 %v783_v18, %v402_v39 }
  0xca   : > { %v467_v42 = vmax.f32 %v421_v36, 0.0  ;;  %v475_v43 = vmax.f32 %v441_v37, 0.0 }
  0xcb   : > { %v452_v44 = vmax.f32 %v383_v40, 0.0  ;;  %v460_v45 = vmax.f32 %v403_v41, 0.0 }
  0xcc   : > { %500 = vst.msk [vmem:[%s791_s28 + $0xb0] sm:$0xff] %vm477_vm1, %v467_v42 }
  0xcd   : > { %508 = vst.msk [vmem:[%s791_s28 + $0xf0] sm:$0xff] %vm477_vm1, %v475_v43 }
  0xce   : > { %485 = vst.msk [vmem:[%s791_s28 + $0x38] sm:$0xff] %vm477_vm1, %v452_v44 }
  0xcf   : > { %493 = vst.msk [vmem:[%s791_s28 + $0x78] sm:$0xff] %vm477_vm1, %v460_v45  ;;  %v422_v46 = vpop.f32.mrf.mxu2  ;;  %v442_v47 = vpop.f32.mrf.mxu3 }
  0xd0   : > { %v423_v48 = vadd.f32 %v783_v18, %v422_v46  ;;  %v443_v49 = vadd.f32 %v783_v18, %v442_v47 }
  0xd2   : > { %v468_v50 = vmax.f32 %v423_v48, 0.0  ;;  %v476_v51 = vmax.f32 %v443_v49, 0.0 }
  0xd4   : > { %501 = vst.msk [vmem:[%s791_s28 + $0xb8] sm:$0xff] %vm477_vm1, %v468_v50 }
  0xd5   : > { %509 = vst.msk [vmem:[%s791_s28 + $0xf8] sm:$0xff] %vm477_vm1, %v476_v51 }
  0xd6 PF: > { %s13_s12 = sadd.s32 1, %s704_s12  }
  0xd7   : > { %p10_p4 = scmp.ge.s32.totalorder %s13_s12, 4  }
  0xd9   :  { %12 = sbr.rel (!%p10_p4) target bundleno = 1 (0x1), region = 62 }

</bundles_post_ra>
